<compile_context>
chip_gen: v6e
topology: v6e:2x2x1
jax: 0.10.0
libtpu: 0.0.40
codegen_flags: <defaults>
</compile_context>

<pallas_src>
import functools

import jax
import jax.numpy as jnp
from jax import lax
from jax.experimental import pallas as pl
from jax.experimental.pallas import tpu as pltpu

EPS = 1e-5  # nn.LayerNorm default eps


def _round_up(n, m):
    return ((n + m - 1) // m) * m


def postnorm_kernel(x_ref, w_ref, b_ref, gamma_ref, beta_ref, o_ref, *, bf16_matmul):
    x = x_ref[...]
    w = w_ref[...]
    if bf16_matmul:
        # bf16 MXU inputs (native on v5e/v6e/v7x), f32 accumulate; w is pre-cast
        # once in the wrapper so the resident weight is already bf16 in VMEM.
        x = x.astype(jnp.bfloat16)

    # fn(x): linear projection on the MXU, accumulate in f32.
    y = jnp.dot(x, w, preferred_element_type=jnp.float32)
    y = y + b_ref[...]                                    # (tm, D) + (1, D)

    # LayerNorm over the last dim (biased variance, matching PyTorch), all f32.
    inv_d = 1.0 / y.shape[-1]                             # constant multiply, no divide
    mean = jnp.sum(y, axis=-1, keepdims=True) * inv_d     # row reduce -> XLU
    centered = y - mean
    var = jnp.sum(centered * centered, axis=-1, keepdims=True) * inv_d
    y_hat = centered * lax.rsqrt(var + EPS)               # rsqrt -> EUP slot (free)

    o_ref[...] = (y_hat * gamma_ref[...] + beta_ref[...]).astype(o_ref.dtype)


@functools.partial(jax.jit, static_argnames=("tm", "bf16_matmul"))
def postnorm(x, w, b, gamma, beta, *, tm=512, bf16_matmul=False):
    """x: (B, S, D); w: (D, D); b/gamma/beta: (D,). Returns (B, S, D)."""
    B, S, D = x.shape
    rows = B * S

    # Row tile: force a multiple of 8 (f32 sublane granule), clamp to workload.
    tm_req = max(8, (int(tm) // 8) * 8)
    tm_eff = min(tm_req, _round_up(rows, 8))
    # Guarantee >= 2 grid steps for large workloads so dimension_semantics
    # ("parallel",) actually lights up both TensorCores on v7x.
    if rows >= 512:
        tm_eff = min(tm_eff, _round_up((rows + 1) // 2, 8))
    grid_m = pl.cdiv(rows, tm_eff)

    # No padding / slicing: Pallas masks the partial last block; LayerNorm is
    # row-independent so the masked-out rows never contaminate valid rows.
    x2 = x.reshape(rows, D)

    w_in = w.astype(jnp.bfloat16) if bf16_matmul else w   # halves weight VMEM/HBM if on
    b2 = b.reshape(1, D).astype(jnp.float32)
    g2 = gamma.reshape(1, D).astype(jnp.float32)
    be2 = beta.reshape(1, D).astype(jnp.float32)

    # VMEM budget: resident weight (single-buffered) + double-buffered x/out
    # tiles + f32 (tm, D) matmul/LN temporaries + the small vectors.
    x_isz = jnp.dtype(x2.dtype).itemsize
    o_isz = jnp.dtype(x.dtype).itemsize
    w_isz = jnp.dtype(w_in.dtype).itemsize
    need = (D * D * w_isz                      # weight (Buffered(1), resident)
            + 2 * tm_eff * D * x_isz           # x tile, double-buffered
            + 2 * tm_eff * D * o_isz           # out tile, double-buffered
            + 3 * tm_eff * D * 4               # y / centered / y_hat f32 temporaries
            + 3 * D * 4)                       # bias / gamma / beta
    try:
        vmem_cap = int(pltpu.get_tpu_info().vmem_capacity_bytes)
    except Exception:  # pragma: no cover - conservative fallback
        vmem_cap = 64 << 20
    vmem_ceiling = max(vmem_cap - (10 << 20), 16 << 20)   # headroom for compiler scratch
    vmem_limit = int(min(max(int(need * 1.25) + (2 << 20), 16 << 20), vmem_ceiling))

    cost = pl.CostEstimate(
        flops=2 * rows * D * D + 10 * rows * D,
        transcendentals=rows,                   # one rsqrt per row
        bytes_accessed=rows * D * (x_isz + o_isz) + D * D * w_isz + 3 * D * 4,
    )

    kernel = functools.partial(postnorm_kernel, bf16_matmul=bf16_matmul)

    out2 = pl.pallas_call(
        kernel,
        out_shape=jax.ShapeDtypeStruct((rows, D), x.dtype),
        grid_spec=pltpu.PrefetchScalarGridSpec(
            num_scalar_prefetch=0,
            grid=(grid_m,),
            in_specs=[
                pl.BlockSpec((tm_eff, D), lambda i: (i, 0)),     # x rows (pipelined)
                # Constant-index blocks: single-buffer (no re-fetch, half VMEM).
                pl.BlockSpec((D, D), lambda i: (0, 0),
                             pipeline_mode=pl.Buffered(1)),      # weight (resident)
                pl.BlockSpec((1, D), lambda i: (0, 0),
                             pipeline_mode=pl.Buffered(1)),      # linear bias
                pl.BlockSpec((1, D), lambda i: (0, 0),
                             pipeline_mode=pl.Buffered(1)),      # LN gamma
                pl.BlockSpec((1, D), lambda i: (0, 0),
                             pipeline_mode=pl.Buffered(1)),      # LN beta
            ],
            out_specs=pl.BlockSpec((tm_eff, D), lambda i: (i, 0)),
        ),
        compiler_params=pltpu.CompilerParams(
            dimension_semantics=("parallel",),   # megacore sharding on v7x
            vmem_limit_bytes=vmem_limit,
        ),
        cost_estimate=cost,
    )(x2, w_in, b2, g2, be2)

    # TODO(synk): for D large enough that the f32 (D,D) weight approaches the
    # per-core VMEM cap (D >~ 2900 on v7x), switch to bf16_matmul=True or add a
    # K (contraction) grid axis with an f32 VMEM accumulator and run the LN
    # epilogue under pl.when(k == num_programs - 1).
    return out2.reshape(B, S, D)


def postnorm_ref(x, w, b, gamma, beta):
    y = jnp.einsum("bsd,de->bse", x, w) + b
    mean = jnp.mean(y, axis=-1, keepdims=True)
    var = jnp.mean((y - mean) ** 2, axis=-1, keepdims=True)
    return (y - mean) * lax.rsqrt(var + EPS) * gamma + beta


if __name__ == "__main__":
    key = jax.random.PRNGKey(0)
    k_x, k_w, k_b = jax.random.split(key, 3)

    B, S, D = 2, 8, 32
    x = jax.random.normal(k_x, (B, S, D), dtype=jnp.float32)

    # fn = Linear(D, D), deterministic init
    w = jax.random.normal(k_w, (D, D), dtype=jnp.float32) * 0.1
    b = jax.random.normal(k_b, (D,), dtype=jnp.float32) * 0.1

    # nn.LayerNorm(dim) default init: weight=1, bias=0
    gamma = jnp.ones((D,), dtype=jnp.float32)
    beta = jnp.zeros((D,), dtype=jnp.float32)

    out = postnorm(x, w, b, gamma, beta)
    jax.block_until_ready(out)

    ref = postnorm_ref(x, w, b, gamma, beta)
    assert out.shape == (B, S, D)
    assert jnp.allclose(out, ref, atol=1e-4, rtol=1e-4)

    print("KERNEL_OK")
</pallas_src>

<mosaic_0001>
module attributes {stable_mosaic.version = 11 : i64} {
  func.func @postnorm_kernel(%arg0: i32, %arg1: memref<16x32xf32, #tpu.memory_space<vmem>>, %arg2: memref<32x32xf32, #tpu.memory_space<vmem>>, %arg3: memref<1x32xf32, #tpu.memory_space<vmem>>, %arg4: memref<1x32xf32, #tpu.memory_space<vmem>>, %arg5: memref<1x32xf32, #tpu.memory_space<vmem>>, %arg6: memref<16x32xf32, #tpu.memory_space<vmem>>) attributes {dimension_semantics = [#tpu.dimension_semantics<parallel>], iteration_bounds = array<i64: 1>, scalar_prefetch = 0 : i64, scratch_operands = 0 : i64, tpu.core_type = #tpu.core_type<tc>, window_params = [{transform_indices = @transform_0, window_bounds = array<i64: 16, 32>}, {pipeline_mode = #tpu.pipeline_mode<synchronous>, transform_indices = @transform_1, window_bounds = array<i64: 32, 32>}, {pipeline_mode = #tpu.pipeline_mode<synchronous>, transform_indices = @transform_2, window_bounds = array<i64: 1, 32>}, {pipeline_mode = #tpu.pipeline_mode<synchronous>, transform_indices = @transform_3, window_bounds = array<i64: 1, 32>}, {pipeline_mode = #tpu.pipeline_mode<synchronous>, transform_indices = @transform_4, window_bounds = array<i64: 1, 32>}, {transform_indices = @transform_5, window_bounds = array<i64: 16, 32>}]} {
    %c0 = arith.constant 0 : index
    %c0_0 = arith.constant 0 : index
    %0 = vector.load %arg1[%c0, %c0_0] : memref<16x32xf32, #tpu.memory_space<vmem>>, vector<16x32xf32>
    %c0_1 = arith.constant 0 : index
    %c0_2 = arith.constant 0 : index
    %1 = vector.load %arg2[%c0_1, %c0_2] : memref<32x32xf32, #tpu.memory_space<vmem>>, vector<32x32xf32>
    %cst = arith.constant dense<0.000000e+00> : vector<16x32xf32>
    %2 = tpu.matmul %0, %1, %cst {dimension_numbers = #tpu.dot_dimension_numbers<[1], [0], [0], [1], [0, 0, 1, 1], [], []>} : vector<16x32xf32>, vector<32x32xf32>, vector<16x32xf32> -> vector<16x32xf32>
    %c0_3 = arith.constant 0 : index
    %c0_4 = arith.constant 0 : index
    %3 = vector.load %arg3[%c0_3, %c0_4] : memref<1x32xf32, #tpu.memory_space<vmem>>, vector<1x32xf32>
    %4 = vector.broadcast %3 : vector<1x32xf32> to vector<16x32xf32>
    %5 = arith.addf %2, %4 : vector<16x32xf32>
    %cst_5 = arith.constant dense<0.000000e+00> : vector<16xf32>
    %6 = vector.multi_reduction <add>, %5, %cst_5 [1] : vector<16x32xf32> to vector<16xf32>
    %7 = vector.shape_cast %6 : vector<16xf32> to vector<16x1xf32>
    %cst_6 = arith.constant 3.125000e-02 : f32
    %8 = vector.broadcast %cst_6 : f32 to vector<16x1xf32>
    %9 = arith.mulf %7, %8 : vector<16x1xf32>
    %10 = vector.broadcast %9 : vector<16x1xf32> to vector<16x32xf32>
    %11 = arith.subf %5, %10 : vector<16x32xf32>
    %12 = arith.mulf %11, %11 : vector<16x32xf32>
    %cst_7 = arith.constant dense<0.000000e+00> : vector<16xf32>
    %13 = vector.multi_reduction <add>, %12, %cst_7 [1] : vector<16x32xf32> to vector<16xf32>
    %14 = vector.shape_cast %13 : vector<16xf32> to vector<16x1xf32>
    %cst_8 = arith.constant 3.125000e-02 : f32
    %15 = vector.broadcast %cst_8 : f32 to vector<16x1xf32>
    %16 = arith.mulf %14, %15 : vector<16x1xf32>
    %cst_9 = arith.constant 9.99999974E-6 : f32
    %17 = vector.broadcast %cst_9 : f32 to vector<16x1xf32>
    %18 = arith.addf %16, %17 : vector<16x1xf32>
    %19 = math.rsqrt %18 : vector<16x1xf32>
    %20 = vector.broadcast %19 : vector<16x1xf32> to vector<16x32xf32>
    %21 = arith.mulf %11, %20 : vector<16x32xf32>
    %c0_10 = arith.constant 0 : index
    %c0_11 = arith.constant 0 : index
    %22 = vector.load %arg4[%c0_10, %c0_11] : memref<1x32xf32, #tpu.memory_space<vmem>>, vector<1x32xf32>
    %23 = vector.broadcast %22 : vector<1x32xf32> to vector<16x32xf32>
    %24 = arith.mulf %21, %23 : vector<16x32xf32>
    %c0_12 = arith.constant 0 : index
    %c0_13 = arith.constant 0 : index
    %25 = vector.load %arg5[%c0_12, %c0_13] : memref<1x32xf32, #tpu.memory_space<vmem>>, vector<1x32xf32>
    %26 = vector.broadcast %25 : vector<1x32xf32> to vector<16x32xf32>
    %27 = arith.addf %24, %26 : vector<16x32xf32>
    %c0_14 = arith.constant 0 : index
    %c0_15 = arith.constant 0 : index
    %28 = vector.load %arg6[%c0_14, %c0_15] : memref<16x32xf32, #tpu.memory_space<vmem>>, vector<16x32xf32>
    tpu.vector_store %arg6[%c0_14, %c0_15], %27 {strides = array<i32>} : memref<16x32xf32, #tpu.memory_space<vmem>>, vector<16x32xf32>,
    return
  }
  func.func @transform_0(%arg0: i32) -> (i32, i32) {
    %c0_i32 = arith.constant 0 : i32
    %c0_i32_0 = arith.constant 0 : i32
    return %arg0, %c0_i32 : i32, i32
  }
  func.func @transform_1(%arg0: i32) -> (i32, i32) {
    %c0_i32 = arith.constant 0 : i32
    %c0_i32_0 = arith.constant 0 : i32
    %c0_i32_1 = arith.constant 0 : i32
    return %c0_i32, %c0_i32_0 : i32, i32
  }
  func.func @transform_2(%arg0: i32) -> (i32, i32) {
    %c0_i32 = arith.constant 0 : i32
    %c0_i32_0 = arith.constant 0 : i32
    %c0_i32_1 = arith.constant 0 : i32
    return %c0_i32, %c0_i32_0 : i32, i32
  }
  func.func @transform_3(%arg0: i32) -> (i32, i32) {
    %c0_i32 = arith.constant 0 : i32
    %c0_i32_0 = arith.constant 0 : i32
    %c0_i32_1 = arith.constant 0 : i32
    return %c0_i32, %c0_i32_0 : i32, i32
  }
  func.func @transform_4(%arg0: i32) -> (i32, i32) {
    %c0_i32 = arith.constant 0 : i32
    %c0_i32_0 = arith.constant 0 : i32
    %c0_i32_1 = arith.constant 0 : i32
    return %c0_i32, %c0_i32_0 : i32, i32
  }
  func.func @transform_5(%arg0: i32) -> (i32, i32) {
    %c0_i32 = arith.constant 0 : i32
    %c0_i32_0 = arith.constant 0 : i32
    return %arg0, %c0_i32 : i32, i32
  }
}

</mosaic_0001>

<bundles_post_ra>
// kernel: postnorm.1
= control target key start
LH: loop header
LB: loop body
LE: loop exit
PB: predicated region body
PF: predicated region fallthrough
CT: control target
= control target key end

     0   :  { %10 = vsyncpa [#allocation3], 0  ;;  %s375_s0 = inlined_call_operand.hbm [shape: f32[16,32], index: 0, kind: input, shape index: {}]   ;;  %s376_s1 = inlined_call_operand.hbm [shape: f32[32,32], index: 1, kind: input, shape index: {}]   ;;  %s377_s2 = inlined_call_operand.vmem [shape: f32[1,32], index: 2, kind: input, shape index: {}]   ;;  %s378_s3 = inlined_call_operand.vmem [shape: f32[1,32], index: 3, kind: input, shape index: {}]   ;;  %s379_s4 = inlined_call_operand.vmem [shape: f32[1,32], index: 4, kind: input, shape index: {}]   ;;  %s380_s5 = inlined_call_operand.hbm [shape: f32[16,32], index: 5, kind: output, shape index: {}]  }
   0x1   :  { %11 = vsyncpa [#allocation6], 0 }
   0x2   :  { %12 = vsyncpa [#allocation4], 0  ;;  %s305_s18 = smov [#allocation2]  }
   0x3   :  { %s18_s19 = sshll.u32 %s305_s18, 4  ;;  %s19_s19 = int_to_ptr.vmem [resolvable:$true] %s18_s19 }
   0x4   :  { %s247_s20 = scalar_lea.vmem %s19_s19, 256  ;;  %p252_p1 = scmp.lt.s32.totalorder %s19_s19, %s19_s19 }
   0x5   :  { %p248_p0 = scmp.ne.s32.totalorder %s19_s19, %s247_s20  ;;  %p253_p2 = scmp.lt.s32.totalorder %s247_s20, %s247_s20 }
   0x7   :  { %p254_p3 = por %p253_p2, %p252_p1 }
   0x9   :  { %p255_p4 = pnand %p254_p3, %p248_p0 }
   0xb   :  { %258 = shalt.err (!%p255_p4)
}
   0xc   :  { %s306_s21 = smov 128   ;;  %s307_s22 = smov 8  }
   0xd   :  { %24 = dma.hbm_to_vmem [thread:$0]  %s375_s0, 256, %s19_s19, [#allocation3], %s306_s21, %s306_s21, %s307_s22  }
   0xe   :  { %s308_s25 = smov [#allocation5]  }
   0xf   :  { %s30_s26 = sshll.u32 %s308_s25, 4  ;;  %s31_s26 = int_to_ptr.vmem [resolvable:$true] %s30_s26 }
  0x10   :  { %s267_s27 = scalar_lea.vmem %s31_s26, 512  ;;  %p272_p6 = scmp.lt.s32.totalorder %s31_s26, %s31_s26 }
  0x11   :  { %p268_p5 = scmp.ne.s32.totalorder %s31_s26, %s267_s27  ;;  %p273_p7 = scmp.lt.s32.totalorder %s267_s27, %s267_s27 }
  0x13   :  { %p274_p8 = por %p273_p7, %p272_p6 }
  0x15   :  { %p275_p9 = pnand %p274_p8, %p268_p5 }
  0x17   :  { %278 = shalt.err (!%p275_p9)
}
  0x18   :  { %36 = dma.hbm_to_vmem [thread:$0]  %s376_s1, 512, %s31_s26, [#allocation6], %s306_s21, %s306_s21, %s307_s22  }
  0x19   :  { %299 = dma.done.wait [#allocation3], 256  }
  0x1a   :  { %300 = vsyncadd [#allocation3], 4294967040 }
  0x1b   :  { %301 = dma.done.wait [#allocation6], 512  }
  0x1c   :  { %302 = vsyncadd [#allocation6], 4294966784  ;;  %vm62_vm0 = vcmask 261120   ;;  %v54_v0 = vld [vmem:[#allocation5 + $0x18] sm:$0xff]  ;;  %v53_v1 = vld [vmem:[#allocation5 + $0x10] sm:$0xff]  ;;  %s309_s8 = smov [#allocation7]  }
  0x1d   :  { %219 = vmatprep.subr.mxu0 %v54_v0  ;;  %v49_v2 = vld [vmem:[#allocation2] sm:$0xff]  ;;  %v52_v3 = vld [vmem:[#allocation5 + $0x8] sm:$0xff]  ;;  %v51_v4 = vld [vmem:[#allocation5] sm:$0xff]  ;;  %s195_s9 = sshll.u32 %s309_s8, 4  ;;  %s196_s9 = int_to_ptr.vmem [resolvable:$true] %s195_s9 }
  0x1e   :  { %220 = vmatpush3.msra.mxu0 %v54_v0  ;;  %227 = vmatprep.mubr.msk.f32.mxu0 %vm62_vm0, %v49_v2  ;;  %v50_v5 = vld [vmem:[#allocation2 + $0x8] sm:$0xff]  ;;  %v208_v7 = vld [vmem:[%s377_s2] ss:$0 sm:$0xff]  ;;  %s279_s10 = scalar_lea.vmem %s196_s9, 256  ;;  %p284_p11 = scmp.lt.s32.totalorder %s196_s9, %s196_s9 }
  0x1f   :  { %221 = vmatprep.subr.mxu0 %v53_v1  ;;  %v211_v30 = vld [vmem:[%s378_s3] ss:$0 sm:$0xff]  ;;  %p280_p10 = scmp.ne.s32.totalorder %s196_s9, %s279_s10  ;;  %p285_p12 = scmp.lt.s32.totalorder %s279_s10, %s279_s10 }
  0x20   :  { %222 = vmatpush3.msra.mxu0 %v53_v1  ;;  %v212_v32 = vld [vmem:[%s379_s4] ss:$0 sm:$0xff] }
  0x21   :  { %223 = vmatprep.subr.mxu0 %v52_v3  ;;  %p286_p13 = por %p285_p12, %p284_p11 }
  0x22   :  { %224 = vmatpush3.msra.mxu0 %v52_v3 }
  0x23   :  { %225 = vmatprep.subr.mxu0 %v51_v4  ;;  %p287_p0 = pnand %p286_p13, %p280_p10 }
  0x24   :  { %226 = vmatpush3.msra.mxu0 %v51_v4 }
  0x25   :  { %228 = vmatmul.mubr.msk.f32.vlgmr.msra.gmra.mxu0 %vm62_vm0, %v50_v5 }
  0xe5   :  { %v229_v6 = vpop.f32.mrf.mxu0 }
  0xe6   :  { %v141_v10 = vadd.f32 %v229_v6, %v208_v7 }
  0xe7   :  { %v135_v8 = vpop.f32.mrf.mxu0 }
  0xe8   :  { %v136_v9 = vadd.f32 %v208_v7, %v135_v8  ;;  %v147_v12 = vsel %vm62_vm0, %v141_v10, 0.0 }
  0xea   :  { %v144_v11 = vsel %vm62_vm0, %v136_v9, 0.0 }
  0xeb   :  { %145 = vadd.xlane.f32.xlu0 %v144_v11 }
  0xef   :  { %148 = vadd.xlane.f32.xlu0 %v147_v12 }
 0x174   :  { %v146_v13 = vpop.xlane.xlu0 %145 }
 0x175   :  { %v150_v14 = vmul.f32 0.03125, %v146_v13 }
 0x177   :  { %v152_v15 = vsub.f32 %v136_v9, %v150_v14 }
 0x178   :  { %v149_v16 = vpop.xlane.xlu0 %148 }
 0x179   :  { %v151_v17 = vmul.f32 0.03125, %v149_v16  ;;  %v154_v18 = vmul.f32 %v152_v15, %v152_v15 }
 0x17b   :  { %v153_v19 = vsub.f32 %v141_v10, %v151_v17  ;;  %v156_v20 = vsel %vm62_vm0, %v154_v18, 0.0 }
 0x17c   :  { %157 = vadd.xlane.f32.xlu1 %v156_v20 }
 0x17d   :  { %v155_v21 = vmul.f32 %v153_v19, %v153_v19 }
 0x17f   :  { %v159_v22 = vsel %vm62_vm0, %v155_v21, 0.0 }
 0x180   :  { %160 = vadd.xlane.f32.xlu1 %v159_v22 }
 0x205   :  { %v158_v23 = vpop.xlane.xlu1 %157 }
 0x206   :  { %v162_v24 = vmul.f32 0.03125, %v158_v23 }
 0x208   :  { %v164_v25 = vadd.f32 1e-05, %v162_v24 }
 0x209   :  { %v161_v26 = vpop.xlane.xlu1 %160 }
 0x20a   :  { %235 = vrsqrt.f32 %v164_v25  ;;  %v163_v27 = vmul.f32 0.03125, %v161_v26 }
 0x20c   :  { %v165_v28 = vadd.f32 1e-05, %v163_v27 }
 0x20e   :  { %237 = vrsqrt.f32 %v165_v28 }
 0x217   :  { %v236_v29 = vpop.eup %235 }
 0x218   :  { %v168_v31 = vmul.f32 %v236_v29, %v152_v15 }
 0x21a   :  { %v177_v33 = vmul.f32 %v211_v30, %v168_v31 }
 0x21b   :  { %v238_v34 = vpop.eup %237 }
 0x21c   :  { %v169_v35 = vmul.f32 %v238_v34, %v153_v19  ;;  %v186_v36 = vadd.f32 %v212_v32, %v177_v33 }
 0x21e   :  { %v178_v37 = vmul.f32 %v211_v30, %v169_v35  ;;  %188 = vst.msk [vmem:[#allocation7] sm:$0xff] %vm62_vm0, %v186_v36 }
 0x220   :  { %v187_v38 = vadd.f32 %v212_v32, %v178_v37 }
 0x222   :  { %189 = vst.msk [vmem:[#allocation7 + $0x8] sm:$0xff] %vm62_vm0, %v187_v38 }
 0x223   :  { %290 = shalt.err (!%p287_p0)
}
 0x224   :  { %201 = dma.vmem_to_hbm [thread:$0]  %s196_s9, 256, %s380_s5, [#allocation4], %s306_s21, %s306_s21, %s307_s22  }
 0x225   :  { %303 = dma.done.wait [#allocation4], 256  }
 0x226   :  { %304 = vsyncadd [#allocation4], 4294967040 }
 0x227   :  { %205 = vsyncpa [#allocation3], 1 }
 0x228   :  { %206 = vsyncpa [#allocation6], 1 }
 0x229   :  { %207 = vsyncpa [#allocation4], 1 }

</bundles_post_ra>
